<compile_context>
chip_gen: v7x
topology: tpu7x:2x2x1
jax: 0.10.0
libtpu: 0.0.40
codegen_flags: <defaults>
</compile_context>

<pallas_src>
import jax
import jax.numpy as jnp
from jax import lax
from jax.experimental import pallas as pl
from jax.experimental.pallas import tpu as pltpu


# ----------------------------- tiled linear kernel ---------------------------

def _linear_kernel(x_ref, w_ref, b_ref, o_ref, acc_ref):
    # x: (tm, tk) bf16, w: (tk, tn) bf16 (pre-transposed), b: (1, tn) f32, acc: (tm, tn) f32
    @pl.when(pl.program_id(2) == 0)
    def _():
        acc_ref[...] = jnp.zeros_like(acc_ref)

    acc_ref[...] += jnp.dot(x_ref[...], w_ref[...],
                            preferred_element_type=jnp.float32)

    @pl.when(pl.program_id(2) == pl.num_programs(2) - 1)
    def _():
        o_ref[...] = (acc_ref[...] + b_ref[...]).astype(o_ref.dtype)


def _pick_block(dim, cap, align):
    """Largest block <= cap that divides `dim` and respects the TPU (8,128) alignment rule."""
    if dim <= cap:
        return dim
    t = (cap // align) * align
    while t >= align:
        if dim % t == 0:
            return t
        t -= align
    return dim  # fall back to the full dimension


def pallas_linear(x, w_t, b, out_dtype=jnp.bfloat16):
    """y = x @ w_t + b with bf16 MXU inputs and f32 accumulation."""
    M, K = x.shape
    N = w_t.shape[1]
    tm = _pick_block(M, 256, 8)
    tn = _pick_block(N, 256, 128)
    tk = _pick_block(K, 512, 128)
    grid = (M // tm, N // tn, K // tk)
    return pl.pallas_call(
        _linear_kernel,
        out_shape=jax.ShapeDtypeStruct((M, N), out_dtype),
        grid_spec=pltpu.PrefetchScalarGridSpec(
            num_scalar_prefetch=0,
            grid=grid,
            in_specs=[
                pl.BlockSpec((tm, tk), lambda i, j, k: (i, k)),
                pl.BlockSpec((tk, tn), lambda i, j, k: (k, j)),
                pl.BlockSpec((1, tn), lambda i, j, k: (0, j)),
            ],
            out_specs=pl.BlockSpec((tm, tn), lambda i, j, k: (i, j)),
            scratch_shapes=[pltpu.VMEM((tm, tn), jnp.float32)],
        ),
        compiler_params=pltpu.CompilerParams(
            dimension_semantics=("parallel", "parallel", "arbitrary")),
    )(x.astype(jnp.bfloat16), w_t.astype(jnp.bfloat16),
      b.reshape(1, N).astype(jnp.float32))


# ----------------------------- attention kernel ------------------------------

def _attn_kernel(q_ref, k_ref, v_ref, rel_ref, e_ref, o_ref):
    # q/k/v : (1, nh, N, hd) bf16 (q is pre-scaled)
    # rel   : (1, nh, N, H+W) bf16  -- decomposed rel-pos factors [rel_h | rel_w]
    # e     : (H+W, N) bf16         -- stacked 0/1 expansion matrix [Eh ; Ew] with
    #                                  Eh[kh, m] = [m // W == kh], Ew[kw, m] = [m % W == kw]
    # o     : (1, N, nh*hd) bf16, head-major channel layout (lane-dense store).
    num_heads = q_ref.shape[1]
    e = e_ref[...]                          # grid-invariant; load once per step
    outs = []
    for h in range(num_heads):
        qh = q_ref[0, h]                    # (N, hd)
        kh = k_ref[0, h]
        vh = v_ref[0, h]

        # logits = q @ k^T, f32 accumulation on the MXU.
        s = lax.dot_general(qh, kh, (((1,), (1,)), ((), ())),
                            preferred_element_type=jnp.float32)        # (N, N)

        # Decomposed rel-pos bias: one (N, H+W) @ (H+W, N) expansion with a 0/1 selection
        # matrix (exact; no (N,N) permutation matmuls, no separate H / W passes).
        s += jnp.dot(rel_ref[0, h], e, preferred_element_type=jnp.float32)

        # softmax over keys; normalization via approximate reciprocal on the EUP.
        s -= jnp.max(s, axis=-1, keepdims=True)
        p = jnp.exp(s)
        p *= pl.reciprocal(jnp.sum(p, axis=-1, keepdims=True), approx=True)

        outs.append(jnp.dot(p.astype(jnp.bfloat16), vh,
                            preferred_element_type=jnp.float32))        # (N, hd)

    # Concatenate heads along lanes and do a single lane-dense (N, dim) store.
    o_ref[0] = jnp.concatenate(outs, axis=-1).astype(o_ref.dtype)


# ----------------------------- JAX glue --------------------------------------

def get_rel_pos_jax(q_size, k_size, rel_pos):
    # rel_pos has length 2*max(q,k)-1 and q_size == k_size here -> pure gather.
    coords = (jnp.arange(q_size)[:, None] - jnp.arange(k_size)[None, :]) + (k_size - 1)
    return rel_pos[coords]                                              # (q, k, C)


def sam_attention_forward(x, params, num_heads):
    B, H, W, dim = x.shape
    head_dim = dim // num_heads
    N = H * W
    scale = head_dim ** (-0.5)

    # --- qkv projection (Pallas tiled matmul) ---
    x_flat = x.reshape(B * N, dim)
    qkv = pallas_linear(x_flat, params["w_qkv"].T, params["b_qkv"],
                        out_dtype=jnp.bfloat16)                         # (B*N, 3*dim)
    qkv = qkv.reshape(B, N, 3, num_heads, head_dim)
    qkv = jnp.transpose(qkv, (2, 0, 3, 1, 4))                           # (3, B, nh, N, hd)
    q = qkv[0] * scale     # scale once; used for both QK^T and rel-pos (matches torch)
    k, v = qkv[1], qkv[2]

    # --- relative-position tables (gather) and the small per-head factors (XLA glue) ---
    Rh = get_rel_pos_jax(H, H, params["rel_pos_h"])                     # (H, H, hd)
    Rw = get_rel_pos_jax(W, W, params["rel_pos_w"])                     # (W, W, hd)
    r_q = q.astype(jnp.float32).reshape(B, num_heads, H, W, head_dim)
    rel_h = jnp.einsum("bghwc,hkc->bghwk", r_q, Rh).reshape(B, num_heads, N, H)
    rel_w = jnp.einsum("bghwc,wkc->bghwk", r_q, Rw).reshape(B, num_heads, N, W)
    rel_hw = jnp.concatenate([rel_h, rel_w], axis=-1).astype(jnp.bfloat16)  # (B, nh, N, H+W)

    # constant stacked 0/1 expansion matrix (grid-invariant kernel input).
    m = jnp.arange(N)
    Eh = (m[None, :] // W == jnp.arange(H)[:, None])                    # (H, N)
    Ew = (m[None, :] % W == jnp.arange(W)[:, None])                     # (W, N)
    E = jnp.concatenate([Eh, Ew], axis=0).astype(jnp.bfloat16)          # (H+W, N)

    attn_out = pl.pallas_call(
        _attn_kernel,
        out_shape=jax.ShapeDtypeStruct((B, N, dim), jnp.bfloat16),
        grid_spec=pltpu.PrefetchScalarGridSpec(
            num_scalar_prefetch=0,
            grid=(B,),
            in_specs=[
                pl.BlockSpec((1, num_heads, N, head_dim), lambda b: (b, 0, 0, 0)),  # q
                pl.BlockSpec((1, num_heads, N, head_dim), lambda b: (b, 0, 0, 0)),  # k
                pl.BlockSpec((1, num_heads, N, head_dim), lambda b: (b, 0, 0, 0)),  # v
                pl.BlockSpec((1, num_heads, N, H + W), lambda b: (b, 0, 0, 0)),     # rel_hw
                pl.BlockSpec((H + W, N), lambda b: (0, 0)),                         # E
            ],
            out_specs=pl.BlockSpec((1, N, dim), lambda b: (b, 0, 0)),
        ),
        compiler_params=pltpu.CompilerParams(dimension_semantics=("parallel",)),
    )(q.astype(jnp.bfloat16), k, v, rel_hw, E)                          # (B, N, dim) bf16

    # --- output projection (Pallas); output is already (B, N, dim): no head transpose needed.
    out = pallas_linear(attn_out.reshape(B * N, dim), params["w_proj"].T,
                        params["b_proj"], out_dtype=jnp.float32)
    return out.reshape(B, H, W, dim)


def reference_forward(x, params, num_heads):
    """Pure-JAX f32 mirror of the PyTorch forward (use_rel_pos=True, qk_norm=False, drop=0)."""
    B, H, W, dim = x.shape
    hd = dim // num_heads
    N = H * W
    scale = hd ** (-0.5)
    qkv = x.reshape(B, N, dim) @ params["w_qkv"].T + params["b_qkv"]
    qkv = qkv.reshape(B, N, 3, num_heads, hd)
    qkv = jnp.transpose(qkv, (2, 0, 3, 1, 4)).reshape(3, B * num_heads, N, hd)
    q, k, v = qkv[0], qkv[1], qkv[2]
    q = q * scale
    attn = q @ jnp.swapaxes(k, -1, -2)
    Rh = get_rel_pos_jax(H, H, params["rel_pos_h"])
    Rw = get_rel_pos_jax(W, W, params["rel_pos_w"])
    r_q = q.reshape(B * num_heads, H, W, hd)
    rel_h = jnp.einsum("bhwc,hkc->bhwk", r_q, Rh)
    rel_w = jnp.einsum("bhwc,wkc->bhwk", r_q, Rw)
    attn = (attn.reshape(B * num_heads, H, W, H, W)
            + rel_h[:, :, :, :, None] + rel_w[:, :, :, None, :]).reshape(B * num_heads, N, N)
    attn = jax.nn.softmax(attn, axis=-1)
    out = (attn @ v).reshape(B, num_heads, H, W, hd)
    out = jnp.transpose(out, (0, 2, 3, 1, 4)).reshape(B, H, W, dim)
    return out @ params["w_proj"].T + params["b_proj"]


# ----------------------------- main -------------------------------------------

if __name__ == "__main__":
    B, H, W = 2, 8, 8
    dim, num_heads = 64, 4
    head_dim = dim // num_heads

    key = jax.random.PRNGKey(0)
    k_x, k1, k2, k3, k4, k5, k6 = jax.random.split(key, 7)

    x = jax.random.normal(k_x, (B, H, W, dim), jnp.float32)
    params = {
        "w_qkv": 0.05 * jax.random.normal(k1, (3 * dim, dim), jnp.float32),
        "b_qkv": 0.05 * jax.random.normal(k2, (3 * dim,), jnp.float32),
        "w_proj": 0.05 * jax.random.normal(k3, (dim, dim), jnp.float32),
        "b_proj": 0.05 * jax.random.normal(k4, (dim,), jnp.float32),
        # rel_pos_zero_init would make these all-zero (a no-op); use small random values
        # so the rel-pos code path is actually exercised.
        "rel_pos_h": 0.05 * jax.random.normal(k5, (2 * H - 1, head_dim), jnp.float32),
        "rel_pos_w": 0.05 * jax.random.normal(k6, (2 * W - 1, head_dim), jnp.float32),
    }

    out = sam_attention_forward(x, params, num_heads)
    out = jax.block_until_ready(out)

    with jax.default_matmul_precision("highest"):
        ref = jax.block_until_ready(reference_forward(x, params, num_heads))

    err = float(jnp.max(jnp.abs(out - ref)))
    assert out.shape == (B, H, W, dim), out.shape
    # bf16 MXU inputs with f32 accumulation: keep a bf16-appropriate tolerance.
    assert err < 1e-2, f"max abs error {err}"
    print("KERNEL_OK")
</pallas_src>

<mosaic_0001>
module attributes {stable_mosaic.version = 11 : i64} {
  func.func @_linear_kernel(%arg0: i32, %arg1: i32, %arg2: i32, %arg3: memref<128x64xbf16, #tpu.memory_space<vmem>>, %arg4: memref<64x192xbf16, #tpu.memory_space<vmem>>, %arg5: memref<1x192xf32, #tpu.memory_space<vmem>>, %arg6: memref<128x192xbf16, #tpu.memory_space<vmem>>, %arg7: memref<128x192xf32, #tpu.memory_space<vmem>>) attributes {dimension_semantics = [#tpu.dimension_semantics<parallel>, #tpu.dimension_semantics<parallel>, #tpu.dimension_semantics<arbitrary>], iteration_bounds = array<i64: 1, 1, 1>, scalar_prefetch = 0 : i64, scratch_operands = 1 : i64, tpu.core_type = #tpu.core_type<tc>, window_params = [{transform_indices = @transform_0, window_bounds = array<i64: 128, 64>}, {transform_indices = @transform_1, window_bounds = array<i64: 64, 192>}, {transform_indices = @transform_2, window_bounds = array<i64: 1, 192>}, {transform_indices = @transform_3, window_bounds = array<i64: 128, 192>}]} {
    %c0_i32 = arith.constant 0 : i32
    %0 = arith.cmpi eq, %arg2, %c0_i32 : i32
    %1 = arith.extui %0 : i1 to i32
    %c0_i32_0 = arith.constant 0 : i32
    %2 = arith.cmpi ne, %1, %c0_i32_0 : i32
    scf.if %2 {
      %cst_10 = arith.constant 0.000000e+00 : f32
      %12 = vector.broadcast %cst_10 : f32 to vector<128x192xf32>
      %c0_11 = arith.constant 0 : index
      %c0_12 = arith.constant 0 : index
      %13 = vector.load %arg7[%c0_11, %c0_12] : memref<128x192xf32, #tpu.memory_space<vmem>>, vector<128x192xf32>
      tpu.vector_store %arg7[%c0_11, %c0_12], %12 {strides = array<i32>} : memref<128x192xf32, #tpu.memory_space<vmem>>, vector<128x192xf32>,
    } else {
    }
    %c0 = arith.constant 0 : index
    %c0_1 = arith.constant 0 : index
    %3 = vector.load %arg7[%c0, %c0_1] : memref<128x192xf32, #tpu.memory_space<vmem>>, vector<128x192xf32>
    %c0_2 = arith.constant 0 : index
    %c0_3 = arith.constant 0 : index
    %4 = vector.load %arg3[%c0_2, %c0_3] : memref<128x64xbf16, #tpu.memory_space<vmem>>, vector<128x64xbf16>
    %c0_4 = arith.constant 0 : index
    %c0_5 = arith.constant 0 : index
    %5 = vector.load %arg4[%c0_4, %c0_5] : memref<64x192xbf16, #tpu.memory_space<vmem>>, vector<64x192xbf16>
    %cst = arith.constant dense<0.000000e+00> : vector<128x192xf32>
    %6 = tpu.matmul %4, %5, %cst {dimension_numbers = #tpu.dot_dimension_numbers<[1], [0], [0], [1], [0, 0, 1, 1], [], []>} : vector<128x64xbf16>, vector<64x192xbf16>, vector<128x192xf32> -> vector<128x192xf32>
    %7 = arith.addf %3, %6 : vector<128x192xf32>
    %c0_6 = arith.constant 0 : index
    %c0_7 = arith.constant 0 : index
    %8 = vector.load %arg7[%c0_6, %c0_7] : memref<128x192xf32, #tpu.memory_space<vmem>>, vector<128x192xf32>
    tpu.vector_store %arg7[%c0_6, %c0_7], %7 {strides = array<i32>} : memref<128x192xf32, #tpu.memory_space<vmem>>, vector<128x192xf32>,
    %c0_i32_8 = arith.constant 0 : i32
    %9 = arith.cmpi eq, %arg2, %c0_i32_8 : i32
    %10 = arith.extui %9 : i1 to i32
    %c0_i32_9 = arith.constant 0 : i32
    %11 = arith.cmpi ne, %10, %c0_i32_9 : i32
    scf.if %11 {
      %c0_10 = arith.constant 0 : index
      %c0_11 = arith.constant 0 : index
      %12 = vector.load %arg7[%c0_10, %c0_11] : memref<128x192xf32, #tpu.memory_space<vmem>>, vector<128x192xf32>
      %c0_12 = arith.constant 0 : index
      %c0_13 = arith.constant 0 : index
      %13 = vector.load %arg5[%c0_12, %c0_13] : memref<1x192xf32, #tpu.memory_space<vmem>>, vector<1x192xf32>
      %14 = vector.broadcast %13 : vector<1x192xf32> to vector<128x192xf32>
      %15 = arith.addf %12, %14 : vector<128x192xf32>
      %16 = arith.truncf %15 : vector<128x192xf32> to vector<128x192xbf16>
      %c0_14 = arith.constant 0 : index
      %c0_15 = arith.constant 0 : index
      %17 = vector.load %arg6[%c0_14, %c0_15] : memref<128x192xbf16, #tpu.memory_space<vmem>>, vector<128x192xbf16>
      tpu.vector_store %arg6[%c0_14, %c0_15], %16 {strides = array<i32>} : memref<128x192xbf16, #tpu.memory_space<vmem>>, vector<128x192xbf16>,
    } else {
    }
    return
  }
  func.func @transform_0(%arg0: i32, %arg1: i32, %arg2: i32) -> (i32, i32) {
    %c0_i32 = arith.constant 0 : i32
    return %arg0, %arg2 : i32, i32
  }
  func.func @transform_1(%arg0: i32, %arg1: i32, %arg2: i32) -> (i32, i32) {
    %c0_i32 = arith.constant 0 : i32
    return %arg2, %arg1 : i32, i32
  }
  func.func @transform_2(%arg0: i32, %arg1: i32, %arg2: i32) -> (i32, i32) {
    %c0_i32 = arith.constant 0 : i32
    %c0_i32_0 = arith.constant 0 : i32
    return %c0_i32, %arg1 : i32, i32
  }
  func.func @transform_3(%arg0: i32, %arg1: i32, %arg2: i32) -> (i32, i32) {
    %c0_i32 = arith.constant 0 : i32
    return %arg0, %arg1 : i32, i32
  }
}

</mosaic_0001>

<bundles_post_ra>
// kernel: tpu_custom_call.1
= control target key start
LH: loop header
LB: loop body
LE: loop exit
PB: predicated region body
PF: predicated region fallthrough
CT: control target
= control target key end

     0   :  { %vm20_vm0 = vcmask 523264   ;;  %v674_v1 = vmov 0   ;;  %v675_v2 = vmov 0.0   ;;  %v427_v18 = vlaneseq  ;;  %s909_s1 = inlined_call_operand.vmem [shape: bf16[64,192], index: 1, kind: input, shape index: {}]   ;;  %s910_s0 = inlined_call_operand.vmem [shape: bf16[128,64], index: 0, kind: input, shape index: {}]   ;;  %s911_s2 = inlined_call_operand.vmem [shape: f32[1,192], index: 2, kind: input, shape index: {}]   ;;  %s912_s3 = inlined_call_operand.vmem [shape: bf16[128,192], index: 3, kind: output, shape index: {}]  }
   0x1   :  { %v654_v0 = vld [vmem:[%s909_s1 + $0x4] ss:$8 sps:$4 sm:$0xff]   ;;  %245 = vmatprep.mubr.bf16.mxu0 %v674_v1  ;;  %285 = vmatprep.mubr.bf16.mxu1 %v674_v1  ;;  %21 = vst.msk [vmem:[#allocation2 + $0x8] sm:$0xff] %vm20_vm0, %v675_v2  ;;  %23 = vst.msk [vmem:[#allocation2 + $0x18] sm:$0xff] %vm20_vm0, %v675_v2  ;;  %v656_v3 = vld [vmem:[%s909_s1] ss:$8 sps:$4 sm:$0xff]  }
   0x2   :  { %25 = vst.msk [vmem:[#allocation2 + $0x28] sm:$0xff] %vm20_vm0, %v675_v2  ;;  %27 = vst.msk [vmem:[#allocation2 + $0x38] sm:$0xff] %vm20_vm0, %v675_v2  ;;  %213 = vmatprep.subr.bf16.mxu0 %v654_v0  ;;  %644 = vmatprep.subr.bf16.mxu1 %v654_v0  ;;  %v657_v4 = vld [vmem:[%s909_s1 + $0x14] ss:$8 sps:$4 sm:$0xff]   ;;  %v659_v5 = vld [vmem:[%s909_s1 + $0x10] ss:$8 sps:$4 sm:$0xff]  }
   0x3   :  { %29 = vst.msk [vmem:[#allocation2 + $0x48] sm:$0xff] %vm20_vm0, %v675_v2  ;;  %31 = vst.msk [vmem:[#allocation2 + $0x58] sm:$0xff] %vm20_vm0, %v675_v2  ;;  %214 = vmatpush1.bf16.msra.mxu0 %v656_v3  ;;  %648 = vmatpush1.bf16.msra.mxu1 %v656_v3  ;;  %v660_v6 = vld [vmem:[%s909_s1 + $0x24] ss:$8 sps:$4 sm:$0xff]   ;;  %v662_v7 = vld [vmem:[%s909_s1 + $0x20] ss:$8 sps:$4 sm:$0xff]  }
   0x4   :  { %33 = vst.msk [vmem:[#allocation2 + $0x68] sm:$0xff] %vm20_vm0, %v675_v2  ;;  %35 = vst.msk [vmem:[#allocation2 + $0x78] sm:$0xff] %vm20_vm0, %v675_v2  ;;  %215 = vmatprep.subr.bf16.mxu0 %v657_v4  ;;  %645 = vmatprep.subr.bf16.mxu1 %v657_v4  ;;  %v663_v8 = vld [vmem:[%s909_s1 + $0x34] ss:$8 sps:$4 sm:$0xff]   ;;  %v665_v9 = vld [vmem:[%s909_s1 + $0x30] ss:$8 sps:$4 sm:$0xff]  }
   0x5   :  { %37 = vst.msk [vmem:[#allocation2 + $0x88] sm:$0xff] %vm20_vm0, %v675_v2  ;;  %39 = vst.msk [vmem:[#allocation2 + $0x98] sm:$0xff] %vm20_vm0, %v675_v2  ;;  %v666_v10 = vld [vmem:[%s910_s0] sm:$0xff]   ;;  %v668_v12 = vld [vmem:[%s910_s0 + $0x8] sm:$0xff]   ;;  %v428_v19 = vshrl.u32 %v427_v18, 7  ;;  %vm565_vm1 = vcmask 1043456  }
   0x6   :  { %41 = vst.msk [vmem:[#allocation2 + $0xa8] sm:$0xff] %vm20_vm0, %v675_v2  ;;  %43 = vst.msk [vmem:[#allocation2 + $0xb8] sm:$0xff] %vm20_vm0, %v675_v2  ;;  %v667_v11 = vld [vmem:[%s910_s0 + $0x20] sm:$0xff]   ;;  %v669_v13 = vld [vmem:[%s910_s0 + $0x28] sm:$0xff]   ;;  %vm566_vm2 = vcmask 523268  }
   0x7   :  { %45 = vst.msk [vmem:[#allocation2 + $0xc8] sm:$0xff] %vm20_vm0, %v675_v2  ;;  %47 = vst.msk [vmem:[#allocation2 + $0xd8] sm:$0xff] %vm20_vm0, %v675_v2  ;;  %216 = vmatpush1.bf16.msra.mxu0 %v659_v5  ;;  %649 = vmatpush1.bf16.msra.mxu1 %v659_v5  ;;  %v670_v14 = vld [vmem:[%s910_s0 + $0x10] sm:$0xff]   ;;  %v672_v16 = vld [vmem:[%s910_s0 + $0x18] sm:$0xff]   ;;  %v429_v32 = vsub.s32 0, %v428_v19  ;;  %v433_v36 = vsub.s32 1, %v428_v19 }
   0x8   :  { %49 = vst.msk [vmem:[#allocation2 + $0xe8] sm:$0xff] %vm20_vm0, %v675_v2  ;;  %51 = vst.msk [vmem:[#allocation2 + $0xf8] sm:$0xff] %vm20_vm0, %v675_v2  ;;  %217 = vmatprep.subr.bf16.mxu0 %v660_v6  ;;  %646 = vmatprep.subr.bf16.mxu1 %v660_v6  ;;  %v671_v15 = vld [vmem:[%s910_s0 + $0x30] sm:$0xff]   ;;  %v673_v17 = vld [vmem:[%s910_s0 + $0x38] sm:$0xff]  }
   0x9   :  { %v53_v20 = vld [vmem:[#allocation2 + $0x8] sm:$0xff]  ;;  %v55_v26 = vld [vmem:[#allocation2 + $0x18] sm:$0xff]  ;;  %v425_v35 = vld [vmem:[%s911_s2] sm:$0x3] }
   0xa   :  { %v775_v39 = vrot.slane %v425_v35, %v429_v32  ;;  %v57_v40 = vld [vmem:[#allocation2 + $0x28] sm:$0xff]  ;;  %v777_v42 = vrot.slane %v425_v35, %v433_v36  ;;  %v59_v47 = vld [vmem:[#allocation2 + $0x38] sm:$0xff]  ;;  %vm787_vm3 = vmor %vm566_vm2, %vm565_vm1 }
   0xb   :  { %218 = vmatpush1.bf16.msra.mxu0 %v662_v7  ;;  %650 = vmatpush1.bf16.msra.mxu1 %v662_v7 }
   0xc   :  { %219 = vmatprep.subr.bf16.mxu0 %v663_v8  ;;  %647 = vmatprep.subr.bf16.mxu1 %v663_v8  ;;  %v69_v21 = vld [vmem:[#allocation2 + $0x88] sm:$0xff]  ;;  %v71_v27 = vld [vmem:[#allocation2 + $0x98] sm:$0xff] }
   0xd   :  { %v73_v41 = vld [vmem:[#allocation2 + $0xa8] sm:$0xff]  ;;  %v75_v48 = vld [vmem:[#allocation2 + $0xb8] sm:$0xff] }
   0xe   :  { %v61_v8 = vld [vmem:[#allocation2 + $0x48] sm:$0xff] }
   0xf   :  { %220 = vmatpush1.bf16.msra.mxu0 %v665_v9  ;;  %651 = vmatpush1.bf16.msra.mxu1 %v665_v9  ;;  %v77_v9 = vld [vmem:[#allocation2 + $0xc8] sm:$0xff] }
  0x12   :  { %604 = vmatmul.mubr.msk.bf16.vlgmr.msra.gmra.mrb[0].mxu0 %vm20_vm0, %v666_v10  ;;  %608 = vmatmul.mubr.msk.bf16.vlgmr.msra.gmra.mrb[0].mxu1 %vm20_vm0, %v667_v11 }
  0x13   :  { %255 = vmatprep.mubr.bf16.mxu0 %v674_v1  ;;  %295 = vmatprep.mubr.bf16.mxu1 %v674_v1 }
  0x1a   :  { %605 = vmatmul.mubr.msk.bf16.gmra.mrb[4].mxu0 %vm20_vm0, %v668_v12  ;;  %609 = vmatmul.mubr.msk.bf16.gmra.mrb[4].mxu1 %vm20_vm0, %v669_v13 }
  0x1b   :  { %265 = vmatprep.mubr.bf16.mxu0 %v674_v1  ;;  %305 = vmatprep.mubr.bf16.mxu1 %v674_v1 }
  0x22   :  { %606 = vmatmul.mubr.msk.bf16.gmra.mrb[8].mxu0 %vm20_vm0, %v670_v14  ;;  %610 = vmatmul.mubr.msk.bf16.gmra.mrb[8].mxu1 %vm20_vm0, %v671_v15 }
  0x23   :  { %275 = vmatprep.mubr.bf16.mxu0 %v674_v1  ;;  %315 = vmatprep.mubr.bf16.mxu1 %v674_v1 }
  0x2a   :  { %607 = vmatmul.mubr.msk.bf16.gmra.mrb[12].mxu0 %vm20_vm0, %v672_v16  ;;  %611 = vmatmul.mubr.msk.bf16.gmra.mrb[12].mxu1 %vm20_vm0, %v673_v17  ;;  %v63_v16 = vld [vmem:[#allocation2 + $0x58] sm:$0xff] }
  0x2b   :  { %v79_v17 = vld [vmem:[#allocation2 + $0xd8] sm:$0xff] }
  0xe5   :  { %v247_v22 = vpop.f32.mrb[0].mxu0  ;;  %v287_v23 = vpop.f32.mrb[0].mxu1 }
  0xe6   :  { %v249_v24 = vpop.f32.mrb[1].mxu0  ;;  %v289_v25 = vpop.f32.mrb[1].mxu1  ;;  %v437_v53 = vadd.f32 %v775_v39, %v247_v22  ;;  %v453_v54 = vadd.f32 %v775_v39, %v287_v23 }
  0xe7   :  { %v327_v28 = vadd.f32 %v249_v24, %v53_v20  ;;  %v343_v29 = vadd.f32 %v289_v25, %v69_v21  ;;  %v251_v30 = vpop.f32.mrb[2].mxu0  ;;  %v291_v31 = vpop.f32.mrb[2].mxu1 }
  0xe8   :  { %v253_v33 = vpop.f32.mrb[3].mxu0  ;;  %v293_v34 = vpop.f32.mrb[3].mxu1  ;;  %v439_v0 = vadd.f32 %v775_v39, %v251_v30  ;;  %v455_v1 = vadd.f32 %v775_v39, %v291_v31 }
  0xe9   :  { %359 = vst.msk [vmem:[#allocation2 + $0x8] sm:$0xff] %vm20_vm0, %v327_v28  ;;  %375 = vst.msk [vmem:[#allocation2 + $0x88] sm:$0xff] %vm20_vm0, %v343_v29  ;;  %v329_v37 = vadd.f32 %v253_v33, %v55_v26  ;;  %v345_v38 = vadd.f32 %v293_v34, %v71_v27 }
  0xeb   :  { %361 = vst.msk [vmem:[#allocation2 + $0x18] sm:$0xff] %vm20_vm0, %v329_v37  ;;  %377 = vst.msk [vmem:[#allocation2 + $0x98] sm:$0xff] %vm20_vm0, %v345_v38 }
  0xed   :  { %v257_v43 = vpop.f32.mrb[4].mxu0  ;;  %v297_v44 = vpop.f32.mrb[4].mxu1 }
  0xee   :  { %v259_v45 = vpop.f32.mrb[5].mxu0  ;;  %v299_v46 = vpop.f32.mrb[5].mxu1  ;;  %v441_v22 = vadd.f32 %v775_v39, %v257_v43  ;;  %v457_v23 = vadd.f32 %v775_v39, %v297_v44  ;;  %v81_v43 = vld [vmem:[#allocation2 + $0xe8] sm:$0xff] }
  0xef   :  { %v331_v49 = vadd.f32 %v259_v45, %v57_v40  ;;  %v347_v50 = vadd.f32 %v299_v46, %v73_v41  ;;  %v261_v51 = vpop.f32.mrb[6].mxu0  ;;  %v301_v52 = vpop.f32.mrb[6].mxu1  ;;  %v65_v41 = vld [vmem:[#allocation2 + $0x68] sm:$0xff] }
  0xf0   :  { %v394_v55 = vld [vmem:[#allocation2 + $0x8] sm:$0xff]  ;;  %v263_v57 = vpop.f32.mrb[7].mxu0  ;;  %v303_v58 = vpop.f32.mrb[7].mxu1  ;;  %v443_v32 = vadd.f32 %v775_v39, %v261_v51  ;;  %v459_v33 = vadd.f32 %v775_v39, %v301_v52  ;;  %v83_v51 = vld [vmem:[#allocation2 + $0xf8] sm:$0xff] }
  0xf1   :  { %v410_v56 = vld [vmem:[#allocation2 + $0x88] sm:$0xff]  ;;  %v438_v59 = vadd.f32 %v777_v42, %v394_v55  ;;  %363 = vst.msk [vmem:[#allocation2 + $0x28] sm:$0xff] %vm20_vm0, %v331_v49  ;;  %379 = vst.msk [vmem:[#allocation2 + $0xa8] sm:$0xff] %vm20_vm0, %v347_v50  ;;  %v333_v61 = vadd.f32 %v263_v57, %v59_v47  ;;  %v349_v62 = vadd.f32 %v303_v58, %v75_v48  ;;  %v67_v50 = vld [vmem:[#allocation2 + $0x78] sm:$0xff] }
  0xf2   :  { %v454_v60 = vadd.f32 %v777_v42, %v410_v56  ;;  %v396_v2 = vld [vmem:[#allocation2 + $0x18] sm:$0xff] }
  0xf3   :  { %v412_v3 = vld [vmem:[#allocation2 + $0x98] sm:$0xff]  ;;  %v628_v4 = vpack.c.bf16 %v438_v59, %v437_v53  ;;  %v440_v6 = vadd.f32 %v777_v42, %v396_v2  ;;  %365 = vst.msk [vmem:[#allocation2 + $0x38] sm:$0xff] %vm20_vm0, %v333_v61  ;;  %381 = vst.msk [vmem:[#allocation2 + $0xb8] sm:$0xff] %vm20_vm0, %v349_v62 }
  0xf4   :  { %v636_v5 = vpack.c.bf16 %v454_v60, %v453_v54  ;;  %v456_v7 = vadd.f32 %v777_v42, %v412_v3 }
  0xf5   :  { %568 = vst.msk [vmem:[%s912_s3] sm:$0xff] %vm787_vm3, %v628_v4  ;;  %v629_v10 = vpack.c.bf16 %v440_v6, %v439_v0  ;;  %v267_v12 = vpop.f32.mrb[8].mxu0  ;;  %v307_v13 = vpop.f32.mrb[8].mxu1 }
  0xf6   :  { %576 = vst.msk [vmem:[%s912_s3 + $0x40] sm:$0xff] %vm787_vm3, %v636_v5  ;;  %v637_v11 = vpack.c.bf16 %v456_v7, %v455_v1  ;;  %v269_v14 = vpop.f32.mrb[9].mxu0  ;;  %v309_v15 = vpop.f32.mrb[9].mxu1  ;;  %v445_v56 = vadd.f32 %v775_v39, %v267_v12  ;;  %v461_v57 = vadd.f32 %v775_v39, %v307_v13 }
  0xf7   :  { %569 = vst.msk [vmem:[%s912_s3 + $0x8] sm:$0xff] %vm787_vm3, %v629_v10  ;;  %v335_v18 = vadd.f32 %v269_v14, %v61_v8  ;;  %v351_v19 = vadd.f32 %v309_v15, %v77_v9  ;;  %v271_v20 = vpop.f32.mrb[10].mxu0  ;;  %v311_v21 = vpop.f32.mrb[10].mxu1 }
  0xf8   :  { %577 = vst.msk [vmem:[%s912_s3 + $0x48] sm:$0xff] %vm787_vm3, %v637_v11  ;;  %v398_v24 = vld [vmem:[#allocation2 + $0x28] sm:$0xff]  ;;  %v273_v26 = vpop.f32.mrb[11].mxu0  ;;  %v313_v27 = vpop.f32.mrb[11].mxu1  ;;  %v447_v3 = vadd.f32 %v775_v39, %v271_v20  ;;  %v463_v4 = vadd.f32 %v775_v39, %v311_v21 }
  0xf9   :  { %v414_v25 = vld [vmem:[#allocation2 + $0xa8] sm:$0xff]  ;;  %v442_v28 = vadd.f32 %v777_v42, %v398_v24  ;;  %367 = vst.msk [vmem:[#allocation2 + $0x48] sm:$0xff] %vm20_vm0, %v335_v18  ;;  %383 = vst.msk [vmem:[#allocation2 + $0xc8] sm:$0xff] %vm20_vm0, %v351_v19  ;;  %v337_v30 = vadd.f32 %v273_v26, %v63_v16  ;;  %v353_v31 = vadd.f32 %v313_v27, %v79_v17 }
  0xfa   :  { %v458_v29 = vadd.f32 %v777_v42, %v414_v25  ;;  %v400_v34 = vld [vmem:[#allocation2 + $0x38] sm:$0xff] }
  0xfb   :  { %v416_v35 = vld [vmem:[#allocation2 + $0xb8] sm:$0xff]  ;;  %v630_v36 = vpack.c.bf16 %v442_v28, %v441_v22  ;;  %v444_v38 = vadd.f32 %v777_v42, %v400_v34  ;;  %369 = vst.msk [vmem:[#allocation2 + $0x58] sm:$0xff] %vm20_vm0, %v337_v30  ;;  %385 = vst.msk [vmem:[#allocation2 + $0xd8] sm:$0xff] %vm20_vm0, %v353_v31 }
  0xfc   :  { %v638_v37 = vpack.c.bf16 %v458_v29, %v457_v23  ;;  %v460_v40 = vadd.f32 %v777_v42, %v416_v35 }
  0xfd   :  { %570 = vst.msk [vmem:[%s912_s3 + $0x10] sm:$0xff] %vm787_vm3, %v630_v36  ;;  %v631_v44 = vpack.c.bf16 %v444_v38, %v443_v32  ;;  %v277_v46 = vpop.f32.mrb[12].mxu0  ;;  %v317_v47 = vpop.f32.mrb[12].mxu1 }
  0xfe   :  { %578 = vst.msk [vmem:[%s912_s3 + $0x50] sm:$0xff] %vm787_vm3, %v638_v37  ;;  %v639_v45 = vpack.c.bf16 %v460_v40, %v459_v33  ;;  %v279_v48 = vpop.f32.mrb[13].mxu0  ;;  %v319_v49 = vpop.f32.mrb[13].mxu1  ;;  %v449_v15 = vadd.f32 %v775_v39, %v277_v46  ;;  %v465_v16 = vadd.f32 %v775_v39, %v317_v47 }
  0xff   :  { %571 = vst.msk [vmem:[%s912_s3 + $0x18] sm:$0xff] %vm787_vm3, %v631_v44  ;;  %v339_v52 = vadd.f32 %v279_v48, %v65_v41  ;;  %v355_v53 = vadd.f32 %v319_v49, %v81_v43  ;;  %v281_v54 = vpop.f32.mrb[14].mxu0  ;;  %v321_v55 = vpop.f32.mrb[14].mxu1 }
 0x100   :  { %579 = vst.msk [vmem:[%s912_s3 + $0x58] sm:$0xff] %vm787_vm3, %v639_v45  ;;  %v402_v58 = vld [vmem:[#allocation2 + $0x48] sm:$0xff]  ;;  %v283_v60 = vpop.f32.mrb[15].mxu0  ;;  %v323_v61 = vpop.f32.mrb[15].mxu1  ;;  %v451_v19 = vadd.f32 %v775_v39, %v281_v54  ;;  %v467_v20 = vadd.f32 %v775_v39, %v321_v55 }
 0x101   :  { %v418_v59 = vld [vmem:[#allocation2 + $0xc8] sm:$0xff]  ;;  %v446_v62 = vadd.f32 %v777_v42, %v402_v58  ;;  %371 = vst.msk [vmem:[#allocation2 + $0x68] sm:$0xff] %vm20_vm0, %v339_v52  ;;  %387 = vst.msk [vmem:[#allocation2 + $0xe8] sm:$0xff] %vm20_vm0, %v355_v53  ;;  %v341_v1 = vadd.f32 %v283_v60, %v67_v50  ;;  %v357_v2 = vadd.f32 %v323_v61, %v83_v51 }
 0x102   :  { %v462_v0 = vadd.f32 %v777_v42, %v418_v59  ;;  %v404_v5 = vld [vmem:[#allocation2 + $0x58] sm:$0xff] }
 0x103   :  { %v420_v6 = vld [vmem:[#allocation2 + $0xd8] sm:$0xff]  ;;  %v632_v7 = vpack.c.bf16 %v446_v62, %v445_v56  ;;  %v448_v9 = vadd.f32 %v777_v42, %v404_v5  ;;  %373 = vst.msk [vmem:[#allocation2 + $0x78] sm:$0xff] %vm20_vm0, %v341_v1  ;;  %389 = vst.msk [vmem:[#allocation2 + $0xf8] sm:$0xff] %vm20_vm0, %v357_v2 }
 0x104   :  { %v640_v8 = vpack.c.bf16 %v462_v0, %v461_v57  ;;  %v464_v10 = vadd.f32 %v777_v42, %v420_v6 }
 0x105   :  { %572 = vst.msk [vmem:[%s912_s3 + $0x20] sm:$0xff] %vm787_vm3, %v632_v7  ;;  %v633_v11 = vpack.c.bf16 %v448_v9, %v447_v3 }
 0x106   :  { %580 = vst.msk [vmem:[%s912_s3 + $0x60] sm:$0xff] %vm787_vm3, %v640_v8  ;;  %v641_v12 = vpack.c.bf16 %v464_v10, %v463_v4 }
 0x107   :  { %573 = vst.msk [vmem:[%s912_s3 + $0x28] sm:$0xff] %vm787_vm3, %v633_v11 }
 0x108   :  { %581 = vst.msk [vmem:[%s912_s3 + $0x68] sm:$0xff] %vm787_vm3, %v641_v12  ;;  %v406_v13 = vld [vmem:[#allocation2 + $0x68] sm:$0xff] }
 0x109   :  { %v422_v14 = vld [vmem:[#allocation2 + $0xe8] sm:$0xff]  ;;  %v450_v17 = vadd.f32 %v777_v42, %v406_v13 }
 0x10a   :  { %v466_v18 = vadd.f32 %v777_v42, %v422_v14  ;;  %v408_v21 = vld [vmem:[#allocation2 + $0x78] sm:$0xff] }
 0x10b   :  { %v424_v22 = vld [vmem:[#allocation2 + $0xf8] sm:$0xff]  ;;  %v634_v23 = vpack.c.bf16 %v450_v17, %v449_v15  ;;  %v452_v25 = vadd.f32 %v777_v42, %v408_v21 }
 0x10c   :  { %v642_v24 = vpack.c.bf16 %v466_v18, %v465_v16  ;;  %v468_v26 = vadd.f32 %v777_v42, %v424_v22 }
 0x10d   :  { %574 = vst.msk [vmem:[%s912_s3 + $0x30] sm:$0xff] %vm787_vm3, %v634_v23  ;;  %v635_v39 = vpack.c.bf16 %v452_v25, %v451_v19 }
 0x10e   :  { %582 = vst.msk [vmem:[%s912_s3 + $0x70] sm:$0xff] %vm787_vm3, %v642_v24  ;;  %v643_v27 = vpack.c.bf16 %v468_v26, %v467_v20 }
 0x10f   :  { %575 = vst.msk [vmem:[%s912_s3 + $0x38] sm:$0xff] %vm787_vm3, %v635_v39 }
 0x110   :  { %583 = vst.msk [vmem:[%s912_s3 + $0x78] sm:$0xff] %vm787_vm3, %v643_v27 }

</bundles_post_ra>
